<compile_context>
chip_gen: v7x
topology: tpu7x:2x2x1
jax: 0.10.0
libtpu: 0.0.40
codegen_flags: <defaults>
</compile_context>

<pallas_src>
import functools

import numpy as np
import jax
import jax.numpy as jnp
from jax.experimental import pallas as pl
from jax.experimental.pallas import tpu as pltpu


def _round_up(v, m):
    return ((v + m - 1) // m) * m


def _bernstein_kernel(x_ref, wc_ref, o_ref, b_scratch, *, order, zoom, pan,
                      r0, r1, k_dim, wc_resident, compute_dtype):
    j = pl.program_id(1)

    # B_all depends only on the batch tile: compute it once per batch tile
    # (at j == 0, the first inner step) and reuse from VMEM for every j.
    @pl.when(j == 0)
    def _():
        x = x_ref[...].astype(jnp.float32)
        t = jnp.tanh(x) * zoom + pan
        xa = t - r0                                    # (TB, I)
        xb = r1 - t                                    # (TB, I)

        # Precompute xb^m; keep xa^k as a single running power.
        xb_pows = [jnp.ones_like(xb)]
        for _ in range(order):
            xb_pows.append(xb_pows[-1] * xb)

        blocks = []
        xa_pow = jnp.ones_like(xa)
        for k in range(order + 1):
            if k > 0:
                xa_pow = xa_pow * xa
            blocks.append(xa_pow * xb_pows[order - k])

        # Zero-pad the contraction axis up to the lane-aligned scratch width
        # (matching zero rows were appended to WC in the wrapper).
        k_pad = b_scratch.shape[-1] - k_dim
        if k_pad > 0:
            blocks.append(jnp.zeros((xa.shape[0], k_pad), jnp.float32))

        # One f32 concat, then ONE cast to the MXU compute dtype.
        b_scratch[...] = jnp.concatenate(blocks, axis=-1).astype(compute_dtype)

    # Resident WC: the whole (nj, K, TO) array lives in VMEM (DMA'd once);
    # select the current output tile with a leading-axis dynamic index.
    wc = wc_ref[j] if wc_resident else wc_ref[...]

    o_ref[...] = jnp.dot(
        b_scratch[...], wc, preferred_element_type=jnp.float32
    ).astype(o_ref.dtype)


def bernstein_layer(x, weights, coeffs, *, order, inter_range,
                    block_batch=256, block_out=512,
                    compute_dtype=jnp.bfloat16,
                    wc_resident_budget_bytes=16 * 1024 * 1024):
    """x: (batch, I); weights: (O, I); coeffs: (O, I, order+1) -> (batch, O)."""
    r0, r1 = float(inter_range[0]), float(inter_range[-1])
    zoom = (r1 - r0) / 2.0
    pan = (r1 + r0) / 2.0

    batch, in_size = x.shape
    out_size = weights.shape[0]
    k_dim = (order + 1) * in_size
    # Pad the contraction depth to a lane-aligned multiple of 128.
    k_dim_p = _round_up(k_dim, 128)

    c_item = np.dtype(compute_dtype).itemsize
    x_item = np.dtype(x.dtype).itemsize
    out_item = x_item

    # Tile sizes: respect the (8,128) block constraint (or full dims); keep
    # the batch tile a multiple of 16 when the compute dtype is sub-32-bit.
    row_mult = 16 if c_item < 4 else 8
    tb = batch if batch <= block_batch else max(
        row_mult, (block_batch // row_mult) * row_mult)
    to = out_size if out_size <= block_out else max(
        128, (block_out // 128) * 128)

    nb = -(-batch // tb)
    nj = -(-out_size // to)
    out_size_p = nj * to

    # Hoist weights*coeffs out of the kernel, contraction-major (row = k*I+i)
    # so no transpose of the weight operand is needed in-kernel.
    wc = weights[:, :, None] * coeffs                       # (O, I, K)
    wc_flat = jnp.transpose(wc, (2, 1, 0)).reshape(k_dim, out_size)

    # WC residency: whole-array in VMEM (DMA'd once, constant index_map) if it
    # fits a conservative budget (counting Pallas' default double buffering);
    # otherwise stream one (K, TO) block per inner (output-tile) step.
    wc_resident = 2 * k_dim_p * out_size_p * c_item <= wc_resident_budget_bytes
    wc_cols = out_size_p if wc_resident else out_size
    wc_flat = jnp.pad(wc_flat,
                      ((0, k_dim_p - k_dim), (0, wc_cols - out_size)))
    wc_flat = wc_flat.astype(compute_dtype)

    if wc_resident:
        # (nj, K, TO): leading-axis dynamic index in-kernel picks the j tile.
        wc_arr = wc_flat.reshape(k_dim_p, nj, to).transpose(1, 0, 2)
        wc_spec = pl.BlockSpec((nj, k_dim_p, to), lambda b, j: (0, 0, 0))
    else:
        wc_arr = wc_flat
        wc_spec = pl.BlockSpec((k_dim_p, to), lambda b, j: (0, j))

    kernel = functools.partial(
        _bernstein_kernel, order=order, zoom=zoom, pan=pan, r0=r0, r1=r1,
        k_dim=k_dim, wc_resident=wc_resident, compute_dtype=compute_dtype)

    # Honest VMEM / cost estimates for this tiling.
    wc_buf_bytes = 2 * k_dim_p * (wc_cols if wc_resident else to) * c_item
    vmem_est = (2 * tb * in_size * x_item      # x double buffer
                + wc_buf_bytes                 # WC buffers
                + 2 * tb * to * out_item       # out double buffer
                + tb * k_dim_p * c_item)       # B_all scratch
    vmem_limit = int(max(32 * 1024 * 1024,
                         min(2 * vmem_est, 64 * 1024 * 1024)))

    wc_hbm_traffic = int(wc_arr.size) * c_item * (1 if wc_resident else nb)
    cost = pl.CostEstimate(
        flops=2 * batch * out_size * k_dim,
        transcendentals=batch * in_size,
        bytes_accessed=(x.size * x_item + wc_hbm_traffic
                        + batch * out_size * out_item),
    )

    return pl.pallas_call(
        kernel,
        out_shape=jax.ShapeDtypeStruct((batch, out_size), x.dtype),
        grid=(nb, nj),
        in_specs=[
            pl.BlockSpec((tb, in_size), lambda b, j: (b, 0)),
            wc_spec,
        ],
        out_specs=pl.BlockSpec((tb, to), lambda b, j: (b, j)),
        scratch_shapes=[pltpu.VMEM((tb, k_dim_p), compute_dtype)],
        compiler_params=pltpu.CompilerParams(
            # Batch axis parallel (megacore sharding on v7x); the output-tile
            # axis must be sequential so the B_all scratch written at j == 0
            # is valid for every later j of the same batch tile.
            dimension_semantics=("parallel", "arbitrary"),
            vmem_limit_bytes=vmem_limit,
        ),
        cost_estimate=cost,
    )(x, wc_arr)


def _reference(x, weights, coeffs, *, order, inter_range):
    """Pure-JAX reference mirroring the PyTorch forward."""
    r0, r1 = float(inter_range[0]), float(inter_range[-1])
    zoom = (r1 - r0) / 2.0
    pan = (r1 + r0) / 2.0
    t = jnp.tanh(x) * zoom + pan
    xa = t - r0
    xb = r1 - t
    ks = jnp.arange(order + 1)
    ber = (xa[..., None] ** ks) * (xb[..., None] ** (order - ks))   # (B, I, K)
    transformed = jnp.einsum("oik,bik->boi", coeffs, ber)           # (B, O, I)
    return jnp.einsum("boi,oi->bo", transformed, weights)


if __name__ == "__main__":
    batch = 64
    input_size = 16
    output_size = 256
    order = 5
    inter_range = (-1.0, 1.0)

    key = jax.random.PRNGKey(0)
    k_x, k_w, k_c = jax.random.split(key, 3)

    x = jax.random.normal(k_x, (batch, input_size), dtype=jnp.float32)
    # nn.Parameter(torch.randn(output_size, input_size))
    weights = jax.random.normal(k_w, (output_size, input_size), dtype=jnp.float32)
    # BernsteinBasisFunction coefficients: randn(order+1) * 0.1, one per (j, i)
    coeffs = 0.1 * jax.random.normal(
        k_c, (output_size, input_size, order + 1), dtype=jnp.float32)

    ref = _reference(x, weights, coeffs, order=order, inter_range=inter_range)

    # f32 MXU operands: tight check.  block_batch=32 / block_out=128 give a
    # 2x2 grid, exercising B_all scratch reuse across output tiles and the
    # resident-WC leading-axis indexing (small tiles for correctness only).
    out_f32 = bernstein_layer(
        x, weights, coeffs, order=order, inter_range=inter_range,
        block_batch=32, block_out=128, compute_dtype=jnp.float32)
    out_f32 = jax.block_until_ready(out_f32)
    assert out_f32.shape == (batch, output_size)
    assert jnp.allclose(out_f32, ref, atol=1e-3, rtol=1e-3), "f32 mismatch vs reference"

    # bf16 MXU operands with f32 accumulation: looser check.
    out_bf16 = bernstein_layer(
        x, weights, coeffs, order=order, inter_range=inter_range,
        block_batch=32, block_out=128, compute_dtype=jnp.bfloat16)
    out_bf16 = jax.block_until_ready(out_bf16)
    rel_err = jnp.max(jnp.abs(out_bf16 - ref)) / jnp.max(jnp.abs(ref))
    assert rel_err < 5e-2, f"bf16 mismatch vs reference: rel_err={rel_err}"

    print("KERNEL_OK")
</pallas_src>

<mosaic_0001>
module attributes {stable_mosaic.version = 11 : i64} {
  func.func @_bernstein_kernel(%arg0: i32, %arg1: i32, %arg2: memref<32x16xf32, #tpu.memory_space<vmem>>, %arg3: memref<2x128x128xf32, #tpu.memory_space<vmem>>, %arg4: memref<32x128xf32, #tpu.memory_space<vmem>>, %arg5: memref<32x128xf32, #tpu.memory_space<vmem>>) attributes {dimension_semantics = [#tpu.dimension_semantics<parallel>, #tpu.dimension_semantics<arbitrary>], iteration_bounds = array<i64: 2, 2>, scalar_prefetch = 0 : i64, scratch_operands = 1 : i64, tpu.core_type = #tpu.core_type<tc>, window_params = [{transform_indices = @transform_0, window_bounds = array<i64: 32, 16>}, {pipeline_mode = #tpu.pipeline_mode<synchronous>, transform_indices = @transform_1, window_bounds = array<i64: 2, 128, 128>}, {transform_indices = @transform_2, window_bounds = array<i64: 32, 128>}]} {
    %c0_i32 = arith.constant 0 : i32
    %0 = arith.cmpi eq, %arg1, %c0_i32 : i32
    %1 = arith.extui %0 : i1 to i32
    %c0_i32_0 = arith.constant 0 : i32
    %2 = arith.cmpi ne, %1, %c0_i32_0 : i32
    scf.if %2 {
      %c0_6 = arith.constant 0 : index
      %c0_7 = arith.constant 0 : index
      %9 = vector.load %arg2[%c0_6, %c0_7] : memref<32x16xf32, #tpu.memory_space<vmem>>, vector<32x16xf32>
      %10 = math.tanh %9 : vector<32x16xf32>
      %cst_8 = arith.constant 1.000000e+00 : f32
      %11 = vector.broadcast %cst_8 : f32 to vector<32x16xf32>
      %12 = arith.mulf %10, %11 : vector<32x16xf32>
      %cst_9 = arith.constant 0.000000e+00 : f32
      %13 = vector.broadcast %cst_9 : f32 to vector<32x16xf32>
      %14 = arith.addf %12, %13 : vector<32x16xf32>
      %cst_10 = arith.constant -1.000000e+00 : f32
      %15 = vector.broadcast %cst_10 : f32 to vector<32x16xf32>
      %16 = arith.subf %14, %15 : vector<32x16xf32>
      %cst_11 = arith.constant 1.000000e+00 : f32
      %17 = vector.broadcast %cst_11 : f32 to vector<32x16xf32>
      %18 = arith.subf %17, %14 : vector<32x16xf32>
      %cst_12 = arith.constant 1.000000e+00 : f32
      %19 = vector.broadcast %cst_12 : f32 to vector<32x16xf32>
      %20 = arith.mulf %19, %18 : vector<32x16xf32>
      %21 = arith.mulf %20, %18 : vector<32x16xf32>
      %22 = arith.mulf %21, %18 : vector<32x16xf32>
      %23 = arith.mulf %22, %18 : vector<32x16xf32>
      %24 = arith.mulf %23, %18 : vector<32x16xf32>
      %cst_13 = arith.constant 1.000000e+00 : f32
      %25 = vector.broadcast %cst_13 : f32 to vector<32x16xf32>
      %26 = arith.mulf %25, %24 : vector<32x16xf32>
      %27 = arith.mulf %25, %16 : vector<32x16xf32>
      %28 = arith.mulf %27, %23 : vector<32x16xf32>
      %29 = arith.mulf %27, %16 : vector<32x16xf32>
      %30 = arith.mulf %29, %22 : vector<32x16xf32>
      %31 = arith.mulf %29, %16 : vector<32x16xf32>
      %32 = arith.mulf %31, %21 : vector<32x16xf32>
      %33 = arith.mulf %31, %16 : vector<32x16xf32>
      %34 = arith.mulf %33, %20 : vector<32x16xf32>
      %35 = arith.mulf %33, %16 : vector<32x16xf32>
      %36 = arith.mulf %35, %19 : vector<32x16xf32>
      %cst_14 = arith.constant 0.000000e+00 : f32
      %37 = vector.broadcast %cst_14 : f32 to vector<32x32xf32>
      %38 = tpu.concatenate %26, %28, %30, %32, %34, %36, %37 in 1 : vector<32x16xf32>, vector<32x16xf32>, vector<32x16xf32>, vector<32x16xf32>, vector<32x16xf32>, vector<32x16xf32>, vector<32x32xf32> -> vector<32x128xf32>
      %c0_15 = arith.constant 0 : index
      %c0_16 = arith.constant 0 : index
      %39 = vector.load %arg5[%c0_15, %c0_16] : memref<32x128xf32, #tpu.memory_space<vmem>>, vector<32x128xf32>
      tpu.vector_store %arg5[%c0_15, %c0_16], %38 {strides = array<i32>} : memref<32x128xf32, #tpu.memory_space<vmem>>, vector<32x128xf32>,
    } else {
    }
    %3 = arith.index_cast %arg1 : i32 to index
    %c0 = arith.constant 0 : index
    %c0_1 = arith.constant 0 : index
    %4 = vector.load %arg3[%3, %c0, %c0_1] : memref<2x128x128xf32, #tpu.memory_space<vmem>>, vector<1x128x128xf32>
    %5 = vector.shape_cast %4 : vector<1x128x128xf32> to vector<128x128xf32>
    %c0_2 = arith.constant 0 : index
    %c0_3 = arith.constant 0 : index
    %6 = vector.load %arg5[%c0_2, %c0_3] : memref<32x128xf32, #tpu.memory_space<vmem>>, vector<32x128xf32>
    %cst = arith.constant dense<0.000000e+00> : vector<32x128xf32>
    %7 = tpu.matmul %6, %5, %cst {dimension_numbers = #tpu.dot_dimension_numbers<[1], [0], [0], [1], [0, 0, 1, 1], [], []>} : vector<32x128xf32>, vector<128x128xf32>, vector<32x128xf32> -> vector<32x128xf32>
    %c0_4 = arith.constant 0 : index
    %c0_5 = arith.constant 0 : index
    %8 = vector.load %arg4[%c0_4, %c0_5] : memref<32x128xf32, #tpu.memory_space<vmem>>, vector<32x128xf32>
    tpu.vector_store %arg4[%c0_4, %c0_5], %7 {strides = array<i32>} : memref<32x128xf32, #tpu.memory_space<vmem>>, vector<32x128xf32>,
    return
  }
  func.func @transform_0(%arg0: i32, %arg1: i32) -> (i32, i32) {
    %c0_i32 = arith.constant 0 : i32
    %c0_i32_0 = arith.constant 0 : i32
    return %arg0, %c0_i32 : i32, i32
  }
  func.func @transform_1(%arg0: i32, %arg1: i32) -> (i32, i32, i32) {
    %c0_i32 = arith.constant 0 : i32
    %c0_i32_0 = arith.constant 0 : i32
    %c0_i32_1 = arith.constant 0 : i32
    %c0_i32_2 = arith.constant 0 : i32
    return %c0_i32, %c0_i32_0, %c0_i32_1 : i32, i32, i32
  }
  func.func @transform_2(%arg0: i32, %arg1: i32) -> (i32, i32) {
    %c0_i32 = arith.constant 0 : i32
    return %arg0, %arg1 : i32, i32
  }
}

</mosaic_0001>

<bundles_post_ra>
// kernel: tpu_custom_call.1
= control target key start
LH: loop header
LB: loop body
LE: loop exit
PB: predicated region body
PF: predicated region fallthrough
CT: control target
= control target key end

     0   :  { %7 = vsyncpa [#allocation4], 0  ;;  %s1224_s0 = inlined_call_operand.vmem [shape: f32[64,16], index: 0, kind: input, shape index: {}]   ;;  %s1225_s1 = inlined_call_operand.hbm [shape: f32[2,128,128], index: 1, kind: input, shape index: {}]   ;;  %s1226_s2 = inlined_call_operand.hbm [shape: f32[64,256], index: 2, kind: output, shape index: {}]  }
   0x1   :  { %8 = vsyncpa [#allocation5], 0 }
   0x2   :  { %10 = vsyncpa [#allocation5 + $0x1], 0  ;;  %s960_s9 = smov 0   ;;  %s962_s10 = smov 0  }
   0x3   :  { %s964_s11 = smov 0   ;;  %s966_s12 = smov 0  }
   0x4   :  { %s968_s13 = smov 0   ;;  %s970_s14 = smov 0  }
   0x5   :  { %s972_s15 = smov 0   ;;  %s974_s16 = smov 0  }
   0x6 LB: > { %s576_s17 = sadd.s32 4294967295, %s931_s16   ;;  %s577_s18 = sadd.s32 4294967294, %s931_s16   ;;  %s931_s16 = sphi %s974_s16, %s16_s16   ;;  %s927_s15 = sphi %s972_s15, %s1246_s15   ;;  %s923_s14 = sphi %s970_s14, %s1245_s14   ;;  %s919_s13 = sphi %s968_s13, %s1244_s13   ;;  %s915_s12 = sphi %s966_s12, %s1243_s12   ;;  %s911_s11 = sphi %s964_s11, %s1242_s11   ;;  %s907_s10 = sphi %s962_s10, %s1241_s10   ;;  %s903_s9 = sphi %s960_s9, %s1240_s9  }
   0x7   : > { %s25_s19 = sadd.s32 1, %s923_s14  ;;  %s28_s20 = sadd.s32 1, %s927_s15 }
   0x8   : > { %p26_p0 = scmp.ge.s32.totalorder %s25_s19, 2  ;;  %s84_s21 = sadd.s32 1, %s911_s11 }
   0x9   : > { %p94_p1 = scmp.ne.s32.totalorder %s911_s11, %s907_s10  ;;  %p95_p2 = scmp.eq.s32.totalorder %s576_s17, 3 }
   0xa   : > { %s1248_s19 = smov (%p26_p0, %s25_s19), 0  ;;  %s1250_s20 = smov (!%p26_p0, %s28_s20), %s927_s15 }
   0xb   : > { %s80_s22 = ssub.s32 %s923_s14, %s1248_s19  ;;  %p1012_p3 = por %p95_p2, %p94_p1 }
   0xc   : > { %p30_p4 = scmp.ge.s32.totalorder %s1250_s20, 2  ;;  %p100_p5 = scmp.ne.s32.totalorder %s907_s10, %s903_s9 }
   0xd   : > { %s1231_s23 = scalar_select %p1012_p3, 1, 0 }
   0xe   : > { %p101_p6 = scmp.eq.s32.totalorder %s577_s18, 3  ;;  %p578_p7 = scmp.ge.s32.totalorder %s931_s16, 1 }
   0xf   : > { %s1252_s20 = smov (%p30_p4, %s1250_s20), 0  ;;  %p108_p9 = scmp.lt.s32.totalorder %s931_s16, 5 }
  0x10   : > { %p1021_p8 = por %p101_p6, %p100_p5  ;;  %s79_s25 = ssub.s32 %s927_s15, %s1252_s20 }
  0x11   : > { %s81_s26 = sor.u32 %s80_s22, %s79_s25  ;;  %p1028_p10 = pnand %p578_p7, %p108_p9 }
  0x12   : > { %s1232_s24 = scalar_select %p1021_p8, 1, 0 }
  0x13   : > { %s1233_s27 = scalar_select %p1028_p10, 1, 0 }
  0x14   : > { %p82_p11 = scmp.eq.s32.totalorder %s81_s26, 0  ;;  %p1032_p12 = scmp.eq.s32.totalorder %s576_s17, 0 }
  0x15   : > { %p711_p13 = pneg %p1028_p10  ;;  %s933_s30 = smov [#allocation3]  }
  0x16   : > { %s1234_s28 = scalar_select %p1032_p12, 1, 0 }
  0x17   : > { %s1039_s29 = scalar_select %p82_p11, %s911_s11, %s84_s21  }
  0x18   : > { %s120_s3 = sshll.u32 %s933_s30, 4  ;;  %p1043_p0 = pnand %p1032_p12, %p711_p13  ;;  %s121_s3 = int_to_ptr.vmem [resolvable:$true] %s120_s3 }
  0x19   : > { %s805_s7 = scalar_lea.hbm %s1225_s1, 4096 }
  0x1a   : > { %p806_p1 = scmp.ne.s32.totalorder %s1225_s1, %s805_s7  ;;  %p807_p2 = pneg %p1043_p0 }
  0x1b   : > { %p812_p6 = scmp.lt.u32.totalorder %s805_s7, %s1225_s1 }
  0x1c   : > { %p808_p4 = pnand %p807_p2, %p806_p1 }
  0x1e   : > { %p809_p5 = pneg %p808_p4 }
  0x20   : > { %p814_p7 = pnand %p812_p6, %p809_p5 }
  0x22   : > { %817 = shalt.err (!%p814_p7)
}
  0x23   : > { %s818_s22 = scalar_lea.vmem %s121_s3, 4096  ;;  %p826_p8 = scmp.lt.s32.totalorder %s121_s3, %s121_s3 }
  0x24   : > { %p819_p9 = scmp.ne.s32.totalorder %s121_s3, %s818_s22  ;;  %p827_p3 = scmp.lt.s32.totalorder %s818_s22, %s818_s22 }
  0x26   : > { %p821_p11 = pnand %p819_p9, %p807_p2  ;;  %p828_p12 = por %p827_p3, %p826_p8 }
  0x28   : > { %p822_p13 = pneg %p821_p11 }
  0x2a   : > { %p829_p10 = pnand %p828_p12, %p822_p13 }
  0x2c   : > { %832 = shalt.err (!%p829_p10)
}
  0x2d   : > { %s934_s25 = smov 128   ;;  %s935_s26 = smov 8  }
  0x2e   : > { %714 = dma.hbm_to_vmem [thread:$0]  (!%p1043_p0), %s1225_s1, 4096, %s121_s3, [#allocation4], %s934_s25, %s934_s25, %s935_s26  }
  0x2f   : > { %p1236_p1 = scmp.ne.s32.totalorder %s1233_s27, 0 }
  0x30   : > { %p1237_p4 = scmp.ne.s32.totalorder (!%p1236_p1), %s1234_s28, 0 }
  0x31   : > { %145 = sbr.rel (%p1236_p1) target bundleno = 506 (0x1fa), region = 28 }
  0x38   : > { %894 = dma.done.wait (%p1237_p4), [#allocation4], 4096  }
  0x39   : > { %896 = vsyncadd (%p1237_p4), [#allocation4], 4294963200  ;;  %s164_s6 = sand.u32 1, %s907_s10   ;;  %s584_s7 = sshll.u32 %s919_s13, 2 }
  0x3a   : > { %s583_s4 = sshll.u32 %s164_s6, 5  ;;  %p168_p3 = scmp.lt.s32.totalorder %s584_s7, 7 }
  0x3b   : > { %s1076_s18 = scalar_lea.vmem [#allocation6], %s583_s4  ;;  %p586_p8 = scmp.ne.s32.totalorder %s915_s12, 0 }
  0x3c   : > { %s1254_s7 = smov (!%p168_p3, %s584_s7), 7  ;;  %s936_s28 = smov (!%p586_p8), 32   ;;  %vm326_vm0 = vcmask (!%p586_p8), 130048   ;;  %vm331_vm1 = vcmask (!%p586_p8), 261120   ;;  %vm336_vm2 = vcmask (!%p586_p8), 392192   ;;  %vm341_vm3 = vcmask (!%p586_p8), 523264  }
  0x3d   : > { %s585_s8 = sshll.u32 %s1254_s7, 3  ;;  %177 = sbr.rel (%p586_p8) target bundleno = 238 (0xee), region = 36  ;;  %vm346_vm4 = vcmask (!%p586_p8), 654336   ;;  %vm351_vm5 = vcmask (!%p586_p8), 785408  }
  0x3e   : > { %s171_s27 = scalar_lea.vmem %s1224_s0, %s585_s8  ;;  %s937_s21 = smov (!%p586_p8), 48  }
  0x3f   : > { %v179_v0 = vld [vmem:[%s171_s27 + $0x8] sm:$0xff] (!%p586_p8)  ;;  %v178_v1 = vld [vmem:[%s171_s27] sm:$0xff] (!%p586_p8)  ;;  %v181_v2 = vld [vmem:[%s171_s27 + $0x18] sm:$0xff] (!%p586_p8)  ;;  %s938_s22 = smov (!%p586_p8), 16   ;;  %s939_s25 = smov (!%p586_p8), 64  }
  0x40   : > { %797 = vtanh.f32 (!%p586_p8), %v179_v0  ;;  %v180_v3 = vld [vmem:[%s171_s27 + $0x10] sm:$0xff] (!%p586_p8)  ;;  %s940_s26 = smov (!%p586_p8), 80  }
  0x41   : > { %799 = vtanh.f32 (!%p586_p8), %v178_v1 }
  0x42   : > { %801 = vtanh.f32 (!%p586_p8), %v181_v2 }
  0x43   : > { %803 = vtanh.f32 (!%p586_p8), %v180_v3 }
  0x4a   : > { %v798_v4 = vpop.eup %797 }
  0x4b   : > { %v800_v5 = vpop.eup %799  ;;  %v1079_v6 = vadd.f32 1.0, %v798_v4  ;;  %v195_v7 = vsub.f32 1.0, %v798_v4 }
  0x4c   : > { %v802_v8 = vpop.eup %801  ;;  %v1081_v9 = vadd.f32 1.0, %v800_v5  ;;  %v194_v10 = vsub.f32 1.0, %v800_v5 }
  0x4d   : > { %v804_v11 = vpop.eup %803  ;;  %v199_v12 = vmul.f32 %v195_v7, %v195_v7  ;;  %v219_v13 = vmul.f32 %v1079_v6, %v1079_v6  ;;  %v1085_v14 = vadd.f32 1.0, %v802_v8  ;;  %v197_v15 = vsub.f32 1.0, %v802_v8 }
  0x4e   : > { %v198_v16 = vmul.f32 %v194_v10, %v194_v10  ;;  %v218_v17 = vmul.f32 %v1081_v9, %v1081_v9  ;;  %v1089_v18 = vadd.f32 1.0, %v804_v11  ;;  %v196_v19 = vsub.f32 1.0, %v804_v11 }
  0x4f   : > { %v203_v20 = vmul.f32 %v199_v12, %v195_v7  ;;  %v201_v21 = vmul.f32 %v197_v15, %v197_v15  ;;  %v221_v22 = vmul.f32 %v1085_v14, %v1085_v14  ;;  %v227_v30 = vmul.f32 %v1079_v6, %v219_v13 }
  0x50   : > { %v202_v23 = vmul.f32 %v198_v16, %v194_v10  ;;  %v200_v24 = vmul.f32 %v196_v19, %v196_v19  ;;  %v220_v25 = vmul.f32 %v1089_v18, %v1089_v18  ;;  %v226_v32 = vmul.f32 %v1081_v9, %v218_v17 }
  0x51   : > { %v223_v26 = vmul.f32 %v219_v13, %v203_v20  ;;  %v205_v27 = vmul.f32 %v201_v21, %v197_v15  ;;  %v231_v36 = vmul.f32 %v227_v30, %v199_v12  ;;  %v229_v37 = vmul.f32 %v1085_v14, %v221_v22 }
  0x52   : > { %v222_v28 = vmul.f32 %v218_v17, %v202_v23  ;;  %v204_v29 = vmul.f32 %v200_v24, %v196_v19  ;;  %v206_v35 = vmul.f32 %v202_v23, %v194_v10  ;;  %v207_v39 = vmul.f32 %v203_v20, %v195_v7 }
  0x53   : > { %268 = vrot.lane.b32.xlu1 %v223_v26, %s936_s28  ;;  %v225_v31 = vmul.f32 %v221_v22, %v205_v27  ;;  %v230_v40 = vmul.f32 %v226_v32, %v198_v16  ;;  %v228_v41 = vmul.f32 %v1089_v18, %v220_v25  ;;  %v209_v42 = vmul.f32 %v205_v27, %v197_v15 }
  0x54   : > { %266 = vrot.lane.b32.xlu0 %v222_v28, %s936_s28  ;;  %v224_v33 = vmul.f32 %v220_v25, %v204_v29  ;;  %v208_v34 = vmul.f32 %v204_v29, %v196_v19  ;;  %v210_v43 = vmul.f32 %v206_v35, %v194_v10  ;;  %v211_v45 = vmul.f32 %v207_v39, %v195_v7 }
  0x55   : > { %v1101_v44 = vmul.f32 %v209_v42, %v197_v15  ;;  %v233_v46 = vmul.f32 %v229_v37, %v201_v21  ;;  %v232_v47 = vmul.f32 %v228_v41, %v200_v24  ;;  %v214_v49 = vmul.f32 %v1081_v9, %v206_v35 }
  0x56   : > { %v1098_v38 = vmul.f32 %v208_v34, %v196_v19  ;;  %v216_v48 = vmul.f32 %v1089_v18, %v208_v34  ;;  %v217_v50 = vmul.f32 %v1085_v14, %v209_v42  ;;  %v235_v51 = vmul.f32 %v1079_v6, %v227_v30 }
  0x57   : > { %272 = vrot.lane.b32.xlu1 %v225_v31, %s936_s28  ;;  %v215_v52 = vmul.f32 %v1079_v6, %v207_v39  ;;  %v234_v53 = vmul.f32 %v1081_v9, %v226_v32  ;;  %v237_v55 = vmul.f32 %v1085_v14, %v229_v37  ;;  %v236_v57 = vmul.f32 %v1089_v18, %v228_v41 }
  0x58   : > { %270 = vrot.lane.b32.xlu0 %v224_v33, %s936_s28  ;;  %v239_v54 = vmul.f32 %v235_v51, %v195_v7  ;;  %v243_v60 = vmul.f32 %v1079_v6, %v235_v51 }
  0x59   : > { %v238_v56 = vmul.f32 %v234_v53, %v194_v10  ;;  %v241_v58 = vmul.f32 %v237_v55, %v197_v15  ;;  %v240_v59 = vmul.f32 %v236_v57, %v196_v19  ;;  %v242_v61 = vmul.f32 %v1081_v9, %v234_v53 }
  0x5a   : > { %v245_v62 = vmul.f32 %v1085_v14, %v237_v55  ;;  %v244_v63 = vmul.f32 %v1089_v18, %v236_v57 }
  0x5b   : > { %284 = vrot.lane.b32.xlu1 %v231_v36, %s937_s21 }
  0x5c   : > { %282 = vrot.lane.b32.xlu0 %v230_v40, %s937_s21 }
  0x5f   : > { %288 = vrot.lane.b32.xlu1 %v233_v46, %s937_s21 }
  0x60   : > { %286 = vrot.lane.b32.xlu0 %v232_v47, %s937_s21 }
  0x63   : > { %254 = vrot.lane.b32.xlu1 %v216_v48, %s938_s22 }
  0x64   : > { %250 = vrot.lane.b32.xlu0 %v214_v49, %s938_s22 }
  0x67   : > { %256 = vrot.lane.b32.xlu1 %v217_v50, %s938_s22 }
  0x68   : > { %252 = vrot.lane.b32.xlu0 %v215_v52, %s938_s22 }
  0x6b   : > { %300 = vrot.lane.b32.xlu1 %v239_v54, %s939_s25 }
  0x6c   : > { %298 = vrot.lane.b32.xlu0 %v238_v56, %s939_s25 }
  0x6f   : > { %304 = vrot.lane.b32.xlu1 %v241_v58, %s939_s25 }
  0x70   : > { %302 = vrot.lane.b32.xlu0 %v240_v59, %s939_s25 }
  0x73   : > { %316 = vrot.lane.b32.xlu1 %v243_v60, %s940_s26 }
  0x74   : > { %314 = vrot.lane.b32.xlu0 %v242_v61, %s940_s26 }
  0x77   : > { %320 = vrot.lane.b32.xlu1 %v245_v62, %s940_s26 }
  0x78   : > { %318 = vrot.lane.b32.xlu0 %v244_v63, %s940_s26 }
  0xc5   : > { %v269_v0 = vpop.permute.xlu1 %268 }
  0xc6   : > { %v267_v1 = vpop.permute.xlu0 %266 }
  0xc9   : > { %v273_v2 = vpop.permute.xlu1 %272 }
  0xca   : > { %v271_v3 = vpop.permute.xlu0 %270 }
  0xcd   : > { %v285_v4 = vpop.permute.xlu1 %284 }
  0xce   : > { %v283_v5 = vpop.permute.xlu0 %282 }
  0xd1   : > { %v289_v7 = vpop.permute.xlu1 %288 }
  0xd2   : > { %v287_v6 = vpop.permute.xlu0 %286 }
  0xd5   : > { %v255_v8 = vpop.permute.xlu1 %254 }
  0xd6   : > { %v251_v10 = vpop.permute.xlu0 %250  ;;  %v329_v22 = vsel %vm326_vm0, %v1098_v38, %v255_v8 }
  0xd7   : > { %v327_v15 = vsel %vm326_vm0, %v210_v43, %v251_v10  ;;  %v334_v27 = vsel %vm331_vm1, %v329_v22, %v271_v3 }
  0xd8   : > { %v332_v18 = vsel %vm331_vm1, %v327_v15, %v267_v1  ;;  %v339_v36 = vsel %vm336_vm2, %v334_v27, %v287_v6 }
  0xd9   : > { %v257_v9 = vpop.permute.xlu1 %256  ;;  %v337_v25 = vsel %vm336_vm2, %v332_v18, %v283_v5 }
  0xda   : > { %v253_v11 = vpop.permute.xlu0 %252  ;;  %v330_v19 = vsel %vm326_vm0, %v1101_v44, %v257_v9 }
  0xdb   : > { %v328_v12 = vsel %vm326_vm0, %v211_v45, %v253_v11  ;;  %v335_v23 = vsel %vm331_vm1, %v330_v19, %v273_v2 }
  0xdc   : > { %v333_v16 = vsel %vm331_vm1, %v328_v12, %v269_v0  ;;  %v340_v33 = vsel %vm336_vm2, %v335_v23, %v289_v7 }
  0xdd   : > { %v301_v13 = vpop.permute.xlu1 %300  ;;  %v338_v20 = vsel %vm336_vm2, %v333_v16, %v285_v4 }
  0xde   : > { %v299_v14 = vpop.permute.xlu0 %298  ;;  %v343_v24 = vsel %vm341_vm3, %v338_v20, %v301_v13 }
  0xdf   : > { %v342_v28 = vsel %vm341_vm3, %v337_v25, %v299_v14 }
  0xe1   : > { %v305_v17 = vpop.permute.xlu1 %304 }
  0xe2   : > { %v303_v21 = vpop.permute.xlu0 %302  ;;  %v345_v35 = vsel %vm341_vm3, %v340_v33, %v305_v17 }
  0xe3   : > { %v344_v38 = vsel %vm341_vm3, %v339_v36, %v303_v21 }
  0xe5   : > { %v317_v26 = vpop.permute.xlu1 %316 }
  0xe6   : > { %v348_v29 = vsel %vm346_vm4, %v343_v24, %v317_v26  ;;  %v315_v30 = vpop.permute.xlu0 %314 }
  0xe7   : > { %v353_v31 = vsel %vm351_vm5, %v348_v29, 0.0  ;;  %v347_v32 = vsel %vm346_vm4, %v342_v28, %v315_v30 }
  0xe8   : > { %357 = vst [vmem:[#allocation2 + $0x8] sm:$0xff] %v353_v31  ;;  %v352_v34 = vsel %vm351_vm5, %v347_v32, 0.0 }
  0xe9   : > { %356 = vst [vmem:[#allocation2] sm:$0xff] %v352_v34  ;;  %v321_v37 = vpop.permute.xlu1 %320 }
  0xea   : > { %v350_v39 = vsel %vm346_vm4, %v345_v35, %v321_v37  ;;  %v319_v40 = vpop.permute.xlu0 %318 }
  0xeb   : > { %v355_v41 = vsel %vm351_vm5, %v350_v39, 0.0  ;;  %v349_v42 = vsel %vm346_vm4, %v344_v38, %v319_v40 }
  0xec   : > { %359 = vst [vmem:[#allocation2 + $0x18] sm:$0xff] %v355_v41  ;;  %v354_v43 = vsel %vm351_vm5, %v349_v42, 0.0 }
  0xed   : > { %358 = vst [vmem:[#allocation2 + $0x10] sm:$0xff] %v354_v43 }
  0xee PF: > { %s591_s30 = sshll.u32 %s915_s12, 7  ;;  %s598_s7 = sshll.u32 %s919_s13, 3 }
  0xef   : > { %s1138_s5 = scalar_lea.vmem [#allocation3], %s591_s30  ;;  %v379_v7 = vld [vmem:[#allocation2 + $0x8] sm:$0xff]  ;;  %s484_s4 = sadd.s32 %s915_s12, %s598_s7 }
  0xf0   : > { %v378_v44 = vld [vmem:[#allocation2] sm:$0xff]  ;;  %v363_v47 = vld [vmem:[%s1138_s5 + $0x8] sm:$0xff]  ;;  %v364_v48 = vld [vmem:[%s1138_s5 + $0x10] sm:$0xff]  ;;  %s595_s8 = sshll.u32 %s484_s4, 7  ;;  %s487_s3 = sshll.u32 %s1076_s18, 4  ;;  %s1164_s3 = int_to_ptr.vmem [resolvable:$true] %s487_s3 }
  0xf1   : > { %651 = vmatprep.mubr.f32.mxu0 %v378_v44  ;;  %v362_v46 = vld [vmem:[%s1138_s5] sm:$0xff]  ;;  %v365_v50 = vld [vmem:[%s1138_s5 + $0x18] sm:$0xff]  ;;  %v367_v53 = vld [vmem:[%s1138_s5 + $0x28] sm:$0xff]  ;;  %s1162_s28 = scalar_lea.hbm %s1226_s2, %s595_s8  ;;  %s1172_s12 = scalar_lea.sflag [#allocation5], %s164_s6 }
  0xf2   : > { %v657_v49 = vpack.c.bf16 %v363_v47, %v362_v46  ;;  %v661_v51 = vpack.c.bf16 %v365_v50, %v364_v48  ;;  %v366_v52 = vld [vmem:[%s1138_s5 + $0x20] sm:$0xff]  ;;  %v368_v55 = vld [vmem:[%s1138_s5 + $0x30] sm:$0xff]  ;;  %v369_v56 = vld [vmem:[%s1138_s5 + $0x38] sm:$0xff]  ;;  %s833_s13 = scalar_lea.vmem %s1164_s3, 512  ;;  %p1238_p12 = scmp.ne.s32.totalorder %s1231_s23, 0 }
  0xf3   : > { %v665_v54 = vpack.c.bf16 %v367_v53, %v366_v52  ;;  %v669_v57 = vpack.c.bf16 %v369_v56, %v368_v55  ;;  %v370_v58 = vld [vmem:[%s1138_s5 + $0x40] sm:$0xff]  ;;  %v371_v59 = vld [vmem:[%s1138_s5 + $0x48] sm:$0xff]  ;;  %v372_v61 = vld [vmem:[%s1138_s5 + $0x50] sm:$0xff]  ;;  %p834_p10 = scmp.ne.s32.totalorder %s1164_s3, %s833_s13  ;;  %s941_s21 = smov [#allocation6]  }
  0xf4   : > { %v380_v45 = vld [vmem:[#allocation2 + $0x10] sm:$0xff]  ;;  %658 = vmatprep.subr.bf16.mxu0 %v657_v49  ;;  %689 = vmatprep.subr.bf16.mxu1 %v657_v49  ;;  %v673_v60 = vpack.c.bf16 %v371_v59, %v370_v58  ;;  %v373_v62 = vld [vmem:[%s1138_s5 + $0x58] sm:$0xff]  ;;  %v374_v0 = vld [vmem:[%s1138_s5 + $0x60] sm:$0xff]  ;;  %s837_s22 = sshll.u32 %s941_s21, 4  ;;  %s838_s22 = int_to_ptr.vmem [resolvable:$false] %s837_s22 }
  0xf5   : > { %654 = vmatprep.mubr.f32.mxu1 %v380_v45  ;;  %660 = vmatpush3.bf16.msra.mxu0 %v657_v49  ;;  %v677_v63 = vpack.c.bf16 %v373_v62, %v372_v61  ;;  %v375_v1 = vld [vmem:[%s1138_s5 + $0x68] sm:$0xff]  ;;  %v376_v3 = vld [vmem:[%s1138_s5 + $0x70] sm:$0xff]  ;;  %v377_v4 = vld [vmem:[%s1138_s5 + $0x78] sm:$0xff]  ;;  %p835_p0 = pnand %p834_p10, %p1238_p12  ;;  %s839_s25 = scalar_lea.vmem %s838_s22, 1024 }
  0xf6   : > { %697 = vmatpush3.bf16.msra.mxu1 %v657_v49  ;;  %662 = vmatprep.subr.bf16.mxu0 %v661_v51  ;;  %v681_v2 = vpack.c.bf16 %v375_v1, %v374_v0  ;;  %v685_v5 = vpack.c.bf16 %v377_v4, %v376_v3  ;;  %v381_v6 = vld [vmem:[#allocation2 + $0x18] sm:$0xff]  ;;  %p840_p5 = scmp.lt.s32.totalorder %s1164_s3, %s838_s22  ;;  %p841_p6 = scmp.lt.s32.totalorder %s839_s25, %s833_s13 }
  0xf7   : > { %690 = vmatprep.subr.bf16.mxu1 %v661_v51  ;;  %p836_p2 = pneg %p835_p0 }
  0xf8   : > { %p842_p7 = por %p841_p6, %p840_p5 }
  0xf9   : > { %664 = vmatpush3.bf16.msra.mxu0 %v661_v51 }
  0xfa   : > { %698 = vmatpush3.bf16.msra.mxu1 %v661_v51  ;;  %666 = vmatprep.subr.bf16.mxu0 %v665_v54  ;;  %p843_p9 = pnand %p842_p7, %p836_p2 }
  0xfb   : > { %691 = vmatprep.subr.bf16.mxu1 %v665_v54 }
  0xfd   : > { %668 = vmatpush3.bf16.msra.mxu0 %v665_v54 }
  0xfe   : > { %699 = vmatpush3.bf16.msra.mxu1 %v665_v54  ;;  %670 = vmatprep.subr.bf16.mxu0 %v669_v57 }
  0xff   : > { %692 = vmatprep.subr.bf16.mxu1 %v669_v57 }
 0x101   : > { %672 = vmatpush3.bf16.msra.mxu0 %v669_v57 }
 0x102   : > { %700 = vmatpush3.bf16.msra.mxu1 %v669_v57  ;;  %674 = vmatprep.subr.bf16.mxu0 %v673_v60 }
 0x103   : > { %693 = vmatprep.subr.bf16.mxu1 %v673_v60 }
 0x105   : > { %676 = vmatpush3.bf16.msra.mxu0 %v673_v60 }
 0x106   : > { %701 = vmatpush3.bf16.msra.mxu1 %v673_v60  ;;  %678 = vmatprep.subr.bf16.mxu0 %v677_v63 }
 0x107   : > { %694 = vmatprep.subr.bf16.mxu1 %v677_v63 }
 0x109   : > { %680 = vmatpush3.bf16.msra.mxu0 %v677_v63 }
 0x10a   : > { %702 = vmatpush3.bf16.msra.mxu1 %v677_v63  ;;  %682 = vmatprep.subr.bf16.mxu0 %v681_v2 }
 0x10b   : > { %695 = vmatprep.subr.bf16.mxu1 %v681_v2 }
 0x10d   : > { %684 = vmatpush3.bf16.msra.mxu0 %v681_v2 }
 0x10e   : > { %703 = vmatpush3.bf16.msra.mxu1 %v681_v2  ;;  %686 = vmatprep.subr.bf16.mxu0 %v685_v5 }
 0x10f   : > { %696 = vmatprep.subr.bf16.mxu1 %v685_v5 }
 0x111   : > { %688 = vmatpush3.bf16.msra.mxu0 %v685_v5 }
 0x112   : > { %704 = vmatpush3.bf16.msra.mxu1 %v685_v5 }
 0x114   : > { %652 = vmatmul.mubr.f32.vlgmr.msra.gmra.mrb[0].mxu0 %v379_v7 }
 0x115   : > { %655 = vmatmul.mubr.f32.vlgmr.msra.gmra.mrb[0].mxu1 %v381_v6 }
 0x1e7   : > { %v653_v8 = vpop.f32.mrb[0].mxu0 }
 0x1e8   : > { %v656_v10 = vpop.f32.mrb[0].mxu1  ;;  %468 = vst [vmem:[%s1076_s18 + $0x8] sm:$0xff] %v653_v8  ;;  %v448_v9 = vpop.f32.mrb[1].mxu0 }
 0x1e9   : > { %470 = vst [vmem:[%s1076_s18 + $0x18] sm:$0xff] %v656_v10  ;;  %v458_v11 = vpop.f32.mrb[1].mxu1  ;;  %467 = vst [vmem:[%s1076_s18] sm:$0xff] %v448_v9 }
 0x1ea   : > { %469 = vst [vmem:[%s1076_s18 + $0x10] sm:$0xff] %v458_v11 }
 0x1eb   : > { %846 = shalt.err (!%p843_p9)
}
 0x1ec   : > { %s847_s6 = scalar_lea.hbm %s1162_s28, 512  ;;  %s851_s30 = scalar_lea.hbm %s1226_s2, 2048 }
 0x1ed   : > { %p848_p11 = scmp.ne.s32.totalorder %s1162_s28, %s847_s6  ;;  %p852_p4 = scmp.lt.u32.totalorder %s1162_s28, %s1226_s2 }
 0x1ee   : > { %p853_p3 = scmp.lt.u32.totalorder %s851_s30, %s847_s6  ;;  %p855_p10 = scmp.lt.u32.totalorder %s847_s6, %s1162_s28 }
 0x1ef   : > { %p849_p13 = pnand %p848_p11, %p1238_p12 }
 0x1f0   : > { %p854_p8 = por %p853_p3, %p852_p4 }
 0x1f1   : > { %p850_p1 = pneg %p849_p13 }
 0x1f2   : > { %p856_p0 = por %p855_p10, %p854_p8 }
 0x1f4   : > { %p857_p2 = pnand %p856_p0, %p850_p1 }
 0x1f6   : > { %860 = shalt.err (!%p857_p2)
}
 0x1f7   : > { %s942_s4 = smov 128   ;;  %s943_s8 = smov 256  }
 0x1f8   : > { %s944_s17 = smov 8  }
 0x1f9   : > { %709 = dma.vmem_to_hbm [thread:$0]  (%p1238_p12), %s1164_s3, 512, %s1162_s28, %s1172_s12, %s942_s4, %s943_s8, %s944_s17  }
 0x1fa PF: > { %p721_p5 = scmp.ge.s32.totalorder %s931_s16, 2  ;;  %s502_s27 = sand.u32 1, %s903_s9  }
 0x1fb   : > { %p1239_p6 = scmp.ne.s32.totalorder %s1232_s24, 0  ;;  %s503_s13 = scalar_lea.sflag [#allocation5], %s502_s27 }
 0x1fd   : > { %p716_p7 = pnand %p721_p5, %p1239_p6 }
 0x1ff   : > { %898 = dma.done.wait (!%p716_p7), %s503_s13, 512  }
 0x200   : > { %900 = vsyncadd (!%p716_p7), %s503_s13, 4294966784  ;;  %s16_s16 = sadd.s32 1, %s931_s16   ;;  %s1240_s9 = smov %s907_s10 }
 0x201   : > { %p13_p9 = scmp.ge.s32.totalorder %s16_s16, 6   ;;  %s1241_s10 = smov %s911_s11 }
 0x202   : > { %s1242_s11 = smov %s1039_s29  ;;  %s1243_s12 = smov %s923_s14 }
 0x203   : > { %s1244_s13 = smov %s927_s15  ;;  %s1245_s14 = smov %s1248_s19 }
 0x204   : > { %s1246_s15 = smov %s1252_s20  ;;  %15 = sbr.rel (!%p13_p9) target bundleno = 6 (0x6), region = 73 }
 0x20b   :  { %508 = vsyncpa [#allocation4], 1 }
 0x20c   :  { %510 = vsyncpa [#allocation4 + $0x1], 1 }
 0x20d   :  { %511 = vsyncpa [#allocation5], 1 }
 0x20e   :  { %513 = vsyncpa [#allocation5 + $0x1], 1 }

</bundles_post_ra>
